<compile_context>
chip_gen: v6e
topology: v6e:2x2x1
jax: 0.10.0
libtpu: 0.0.40
codegen_flags: <defaults>
</compile_context>

<pallas_src>
import functools

import jax
import jax.numpy as jnp
import numpy as np
from jax.experimental import pallas as pl
from jax.experimental.pallas import tpu as pltpu  # noqa: F401  (TPU backend)

LANES = 128      # one vreg lane row
LOSS_PAD = 1.0   # invariant: log(LOSS_PAD) == 0, so padded lanes vanish under SI / gls


def _make_mtl_kernel(method: str, n: int, scale_invariant: bool,
                     coef_list, reg_const: float):
    """Build the Pallas kernel body for a (static) weighting method.

    All per-task coefficients are baked as scalar immediates (no coef input).
    """
    reg_const = float(reg_const)
    inv_n = 1.0 / float(n)
    needs_coef = coef_list is not None
    if needs_coef:
        coef_list = [float(c) for c in coef_list]

    def _lane_iota():
        return jax.lax.broadcasted_iota(jnp.int32, (1, LANES), 1)

    def kernel(losses_ref, out_ref):
        l = losses_ref[...]                       # (1, 128) f32, lanes >= n padded with 1.0
        if scale_invariant:
            l = jnp.log(l)                        # SI; padded lanes -> log(1) = 0

        if needs_coef:
            # Coefficient row built from scalar immediates: lanes >= n stay exactly 0,
            # so the full-lane reduce needs no mask; reg_const is a baked constant.
            lane = _lane_iota()
            coef = jnp.zeros((1, LANES), jnp.float32)
            for i, c in enumerate(coef_list):
                coef = jnp.where(lane == i, jnp.float32(c), coef)
            total = reg_const + jnp.sum(coef * l, axis=-1, keepdims=True)

        elif method == 'gls':
            # GLSLoss: pow(prod(l), 1/n) == exp(mean(log l)) for positive l.
            # LOSS_PAD == 1.0 -> log(pad) == 0 contributes nothing: no lane mask.
            total = jnp.exp(jnp.sum(jnp.log(l), axis=-1, keepdims=True) * inv_n)

        elif method == 'inv_per_iter':
            # AdaptiveInverseWeightedLoss (per_iter): w = sum(l) / l / n
            # (torch detaches w; forward value unchanged, no VJP defined here).
            lane = _lane_iota()
            mask = lane < n
            lm = jnp.where(mask, l, 0.0)
            s = jnp.sum(lm, axis=-1, keepdims=True)
            w = s / jnp.where(mask, l, 1.0) * inv_n
            total = jnp.sum(jnp.where(mask, l * w, 0.0), axis=-1, keepdims=True)

        else:
            raise NotImplementedError(f'weight_method={method}')

        total_row = jnp.broadcast_to(total, (1, LANES))
        if scale_invariant:
            # Single lane-dense row: lanes [0, n) = SI losses, last lane = total.
            lane = _lane_iota()
            out_ref[...] = jnp.where(lane == LANES - 1, total_row, l)
        else:
            # Non-SI: losses are returned by the wrapper directly; only the total
            # leaves the kernel (one unmasked (1, 128) store).
            out_ref[...] = total_row

    return kernel


class MTLWeightedLossPallas:
    """JAX/Pallas port of MTLWeightedLoss.forward (stateless weighting methods)."""

    SUPPORTED = ['scalar', 'uncertainty_v1', 'uncertainty_v2', 'gls',
                 'inv_per_iter']

    def __init__(self, weight_method, loss_weights, loss_names=None,
                 task_coefs=None, scale_invariant=False):
        assert weight_method in self.SUPPORTED
        assert LOSS_PAD == 1.0   # kernel invariant: padded lanes vanish under log()
        if weight_method == 'gls':
            # TODO(synk): gls + scale_invariant would apply log twice
            # (NaN for losses in (0,1)) and is not the intended GLS semantics.
            assert not scale_invariant, 'gls + scale_invariant is not supported'
        self.weight_method = weight_method
        self.scale_invariant = scale_invariant
        if loss_names is None:
            loss_names = [f'loss_{i}' for i in range(len(loss_weights))]
        self.loss_names = loss_names
        self.active_loss_idxs = [i for i, w in enumerate(loss_weights)
                                 if w > 0.0]
        self.n = len(self.active_loss_idxs)
        assert 1 <= self.n <= LANES - 1   # last lane reserved for the packed total

        if task_coefs is None:
            task_coefs = [1.0] * len(loss_weights)

        # --- fold all per-task parameters on the host (construction time) ----
        # (matches the torch module's deterministic __init__: log_sigmas = 0.0)
        init_log_sigmas = np.zeros((self.n,), np.float64)
        active_w = np.asarray([loss_weights[j] for j in self.active_loss_idxs],
                              np.float64)
        active_c = np.asarray([task_coefs[j] for j in self.active_loss_idxs],
                              np.float64)

        # kept for inspection / reference checks
        self.log_sigmas = jnp.asarray(init_log_sigmas, jnp.float32)
        self.scalar_weights = jnp.asarray(active_w, jnp.float32)
        self.task_coefs_active = jnp.asarray(active_c, jnp.float32)

        reg_const = 0.0
        coef_list = None
        if weight_method == 'scalar':
            coef_list = active_w.tolist()                     # sum(w_i * l_i)
        elif weight_method in ('uncertainty_v1', 'uncertainty_v2'):
            vars_ = np.exp(2.0 * init_log_sigmas)
            coef_list = (active_c / vars_).tolist()
            if weight_method == 'uncertainty_v1':
                reg_const = float(np.sum(init_log_sigmas))
            else:
                reg_const = float(np.sum(np.log1p(vars_)))
        # 'gls' / 'inv_per_iter' need no parameter constants at all.

        kernel = _make_mtl_kernel(weight_method, self.n, scale_invariant,
                                  coef_list, reg_const)

        vec_spec = pl.BlockSpec((1, LANES), lambda: (0, 0))
        self._pcall = pl.pallas_call(
            kernel,
            grid=(),                       # single program; one vreg of work
            in_specs=[vec_spec],           # single (1,128) input DMA
            out_specs=vec_spec,            # single (1,128) output DMA
            out_shape=jax.ShapeDtypeStruct((1, LANES), jnp.float32),
        )

    @functools.partial(jax.jit, static_argnums=0)
    def _run_packed(self, active_vec):
        # All glue (reshape, pad, unpack) fuses into this single XLA program.
        packed = active_vec.astype(jnp.float32).reshape(1, self.n)
        packed = jnp.concatenate(
            [packed, jnp.full((1, LANES - self.n), LOSS_PAD, jnp.float32)],
            axis=1)
        out = self._pcall(packed)
        if self.scale_invariant:
            return out[0, LANES - 1], out[0, :self.n]   # total, SI losses
        return out[0, 0], active_vec                    # total, passthrough

    def forward_packed(self, active_vec):
        """Fast path: caller supplies the n active losses as one (n,) array."""
        return self._run_packed(active_vec)

    def __call__(self, *losses):
        active = [losses[idx] for idx in self.active_loss_idxs]
        active_vec = jnp.stack(
            [jnp.asarray(a, jnp.float32).reshape(()) for a in active])
        total, vec = self._run_packed(active_vec)
        if self.scale_invariant:
            act = [vec[i] for i in range(self.n)]
        else:
            # Non-SI losses are the caller's values; no kernel round-trip needed.
            act = [jnp.asarray(a, jnp.float32) for a in active]
        return total, act


# ---------------------------------------------------------------------------
# Pure-JAX references for verification
# ---------------------------------------------------------------------------
def _ref_uncertainty_v2(l, log_sig, coef):
    vars_ = jnp.exp(2.0 * log_sig)
    return jnp.sum(jnp.log(1.0 + vars_)) + jnp.sum((coef / vars_) * l)


if __name__ == "__main__":
    key = jax.random.PRNGKey(0)
    # 4 task losses (scalars), e.g. coming from 4 heads of an MTL model.
    raw = jax.random.uniform(key, (4,), dtype=jnp.float32,
                             minval=0.1, maxval=2.0)
    losses = [raw[i] for i in range(4)]

    loss_weights = [1.0, 0.5, 0.0, 2.0]          # loss_2 inactive (w <= 0)
    task_coefs = [1.0, 0.5, 1.0, 0.5]            # cls=1.0, reg=0.5
    active_idx = [0, 1, 3]
    raw_active = jnp.stack([raw[i] for i in active_idx])
    n_act = len(active_idx)

    # --- uncertainty_v2 (default-style config) ---
    mtl_u = MTLWeightedLossPallas('uncertainty_v2', loss_weights,
                                  task_coefs=task_coefs)
    total_u, act_u = mtl_u(*losses)
    jax.block_until_ready(total_u)
    act_vec = jnp.stack(act_u)
    ref_u = _ref_uncertainty_v2(act_vec, mtl_u.log_sigmas,
                                mtl_u.task_coefs_active)
    assert jnp.allclose(act_vec, raw_active, rtol=1e-6, atol=1e-6)
    assert jnp.allclose(total_u, ref_u, rtol=1e-5, atol=1e-5), (total_u, ref_u)

    # --- scalar weighting with scale-invariant log ---
    mtl_s = MTLWeightedLossPallas('scalar', loss_weights,
                                  scale_invariant=True)
    total_s, act_s = mtl_s(*losses)
    jax.block_until_ready(total_s)
    ref_s = jnp.sum(mtl_s.scalar_weights * jnp.log(raw_active))
    assert jnp.allclose(jnp.stack(act_s), jnp.log(raw_active),
                        rtol=1e-5, atol=1e-6)
    assert jnp.allclose(total_s, ref_s, rtol=1e-5, atol=1e-5), (total_s, ref_s)

    # --- gls ---
    mtl_g = MTLWeightedLossPallas('gls', loss_weights)
    total_g, _ = mtl_g(*losses)
    jax.block_until_ready(total_g)
    ref_g = jnp.prod(raw_active) ** (1.0 / n_act)
    assert jnp.allclose(total_g, ref_g, rtol=1e-4, atol=1e-5), (total_g, ref_g)

    # --- inv_per_iter (also exercises the packed fast path) ---
    mtl_i = MTLWeightedLossPallas('inv_per_iter', loss_weights)
    total_i, _ = mtl_i(*losses)
    total_ip, _ = mtl_i.forward_packed(raw_active)
    jax.block_until_ready(total_i)
    jax.block_until_ready(total_ip)
    w_i = jnp.sum(raw_active) / raw_active / n_act
    ref_i = jnp.sum(raw_active * w_i)
    assert jnp.allclose(total_i, ref_i, rtol=1e-5, atol=1e-5), (total_i, ref_i)
    assert jnp.allclose(total_ip, ref_i, rtol=1e-5, atol=1e-5), (total_ip, ref_i)

    print("KERNEL_OK")
</pallas_src>

<mosaic_0001>
module attributes {stable_mosaic.version = 11 : i64} {
  func.func @kernel(%arg0: memref<1x128xf32, #tpu.memory_space<vmem>>, %arg1: memref<1x128xf32, #tpu.memory_space<vmem>>) attributes {dimension_semantics = [], scalar_prefetch = 0 : i64, scratch_operands = 0 : i64, tpu.core_type = #tpu.core_type<tc>} {
    %c0 = arith.constant 0 : index
    %c0_0 = arith.constant 0 : index
    %0 = vector.load %arg0[%c0, %c0_0] : memref<1x128xf32, #tpu.memory_space<vmem>>, vector<1x128xf32>
    %1 = tpu.iota {dimensions = array<i32: 1>} : vector<1x128xi32>
    %cst = arith.constant 0.000000e+00 : f32
    %2 = vector.broadcast %cst : f32 to vector<1x128xf32>
    %c0_i32 = arith.constant 0 : i32
    %3 = vector.broadcast %c0_i32 : i32 to vector<1x128xi32>
    %4 = arith.cmpi eq, %1, %3 : vector<1x128xi32>
    %cst_1 = arith.constant 1.000000e+00 : f32
    %5 = vector.broadcast %cst_1 : f32 to vector<1x128xf32>
    %6 = arith.select %4, %5, %2 : vector<1x128xi1>, vector<1x128xf32>
    %c1_i32 = arith.constant 1 : i32
    %7 = vector.broadcast %c1_i32 : i32 to vector<1x128xi32>
    %8 = arith.cmpi eq, %1, %7 : vector<1x128xi32>
    %cst_2 = arith.constant 5.000000e-01 : f32
    %9 = vector.broadcast %cst_2 : f32 to vector<1x128xf32>
    %10 = arith.select %8, %9, %6 : vector<1x128xi1>, vector<1x128xf32>
    %c2_i32 = arith.constant 2 : i32
    %11 = vector.broadcast %c2_i32 : i32 to vector<1x128xi32>
    %12 = arith.cmpi eq, %1, %11 : vector<1x128xi32>
    %cst_3 = arith.constant 5.000000e-01 : f32
    %13 = vector.broadcast %cst_3 : f32 to vector<1x128xf32>
    %14 = arith.select %12, %13, %10 : vector<1x128xi1>, vector<1x128xf32>
    %15 = arith.mulf %14, %0 : vector<1x128xf32>
    %cst_4 = arith.constant dense<0.000000e+00> : vector<1xf32>
    %16 = vector.multi_reduction <add>, %15, %cst_4 [1] : vector<1x128xf32> to vector<1xf32>
    %17 = vector.shape_cast %16 : vector<1xf32> to vector<1x1xf32>
    %cst_5 = arith.constant 2.07944155 : f32
    %18 = vector.broadcast %cst_5 : f32 to vector<1x1xf32>
    %19 = arith.addf %18, %17 : vector<1x1xf32>
    %20 = vector.shape_cast %19 : vector<1x1xf32> to vector<1x1xf32>
    %21 = vector.broadcast %20 : vector<1x1xf32> to vector<1x128xf32>
    %c0_6 = arith.constant 0 : index
    %c0_7 = arith.constant 0 : index
    %22 = vector.load %arg1[%c0_6, %c0_7] : memref<1x128xf32, #tpu.memory_space<vmem>>, vector<1x128xf32>
    tpu.vector_store %arg1[%c0_6, %c0_7], %21 {strides = array<i32>} : memref<1x128xf32, #tpu.memory_space<vmem>>, vector<1x128xf32>,
    return
  }
}

</mosaic_0001>

<bundles_post_ra>
// kernel: _run_packed.1
= control target key start
LH: loop header
LB: loop body
LE: loop exit
PB: predicated region body
PF: predicated region fallthrough
CT: control target
= control target key end

     0   :  { %v10_v0 = vlaneseq  ;;  %s81_s0 = inlined_call_operand.vmem [shape: f32[1,128], index: 0, kind: input, shape index: {}]   ;;  %s82_s1 = inlined_call_operand.hbm [shape: f32[1,128], index: 1, kind: output, shape index: {}]  }
   0x1   :  { %6 = vsyncpa [#allocation3], 0  ;;  %v9_v2 = vld [vmem:[%s81_s0] sm:$0x1]  ;;  %v63_v3 = vmov 0.0   ;;  %vm19_vm3 = vcmask 1040384  }
   0x2   :  { %v11_v1 = vand.u32 127, %v10_v0  ;;  %s64_s8 = smov [#allocation2]  }
   0x3   :  { %s31_s9 = sshll.u32 %s64_s8, 4  ;;  %s32_s9 = int_to_ptr.vmem [resolvable:$true] %s31_s9 }
   0x4   :  { %vm12_vm0 = vcmp.eq.s32.totalorder %v11_v1, 0  ;;  %vm14_vm1 = vcmp.eq.s32.totalorder %v11_v1, 1  ;;  %vm16_vm2 = vcmp.eq.s32.totalorder %v11_v1, 2  ;;  %s41_s10 = scalar_lea.vmem %s32_s9, 16  ;;  %s45_s11 = scalar_lea.vmem %s32_s9, 32 }
   0x5   :  { %v13_v4 = vsel %vm12_vm0, 1.0, %v63_v3  ;;  %p42_p0 = scmp.ne.s32.totalorder %s32_s9, %s41_s10  ;;  %p46_p1 = scmp.lt.s32.totalorder %s32_s9, %s32_s9 }
   0x6   :  { %v15_v5 = vsel %vm14_vm1, 0.5, %v13_v4  ;;  %p47_p2 = scmp.lt.s32.totalorder %s45_s11, %s41_s10 }
   0x7   :  { %v17_v6 = vsel %vm16_vm2, 0.5, %v15_v5 }
   0x8   :  { %v18_v7 = vmul.f32 %v17_v6, %v9_v2  ;;  %p48_p3 = por %p47_p2, %p46_p1 }
   0xa   :  { %v20_v8 = vsel %vm19_vm3, %v18_v7, 0.0  ;;  %p49_p4 = pnand %p48_p3, %p42_p0 }
   0xb   :  { %21 = vadd.xlane.f32.xlu0 %v20_v8 }
  0x94   :  { %v22_v9 = vpop.xlane.xlu0 %21 }
  0x95   :  { %v23_v10 = vadd.f32 2.0794415, %v22_v9 }
  0x97   :  { %24 = vst [vmem:[#allocation2] sm:$0x1] %v23_v10 }
  0x98   :  { %52 = shalt.err (!%p49_p4)
}
  0x99   :  { %34 = dma.vmem_to_hbm [thread:$0]  %s32_s9, 16, %s82_s1, [#allocation3]  }
  0x9a   :  { %61 = dma.done.wait [#allocation3], 16  }
  0x9b   :  { %62 = vsyncadd [#allocation3], 4294967280 }
  0x9c   :  { %38 = vsyncpa [#allocation3], 1 }

</bundles_post_ra>
